<compile_context>
chip_gen: v7x
topology: tpu7x:2x2x1
jax: 0.10.0
libtpu: 0.0.40
codegen_flags: <defaults>
</compile_context>

<pallas_src>
import functools
import math

import jax
import jax.numpy as jnp
from jax import lax
from jax.experimental import pallas as pl
from jax.experimental.pallas import tpu as pltpu


_CONV_CFG = [  # (kh, kw, cin, cout, conv_stride, pool_kernel_or_None)
    (3, 3, 1, 16, 1, None),
    (3, 3, 16, 32, 1, None),
    (5, 5, 32, 64, 1, 2),
    (5, 5, 64, 128, 1, 2),
    (5, 5, 128, 256, 1, 3),
    (7, 7, 256, 256, 2, 3),
    (2, 2, 256, 512, 2, None),
]


def _round_up(x, m):
    return (x + m - 1) // m * m


# --------------------------- roll-direction probe ----------------------------

@functools.lru_cache(maxsize=None)
def _roll_like_jnp():
    """True iff pltpu.roll(x, s, ax) == jnp.roll(x, s, ax) on this backend."""
    def kernel(x_ref, o_ref):
        o_ref[...] = pltpu.roll(x_ref[...], 1, 1)
    x = jnp.tile(jnp.arange(128, dtype=jnp.float32)[None, :], (8, 1))
    y = pl.pallas_call(
        kernel, out_shape=jax.ShapeDtypeStruct((8, 128), jnp.float32))(x)
    return bool(y[0, 0] == 127.0)


def _shift_amount(dw, n):
    # rolled[:, p] == original[:, p + dw]   (valid for p + dw < n)
    return (n - dw) if _roll_like_jnp() else dw


# ------------------------------ Pallas kernels ------------------------------

def _conv_s1_kernel(*refs, kh, kw, pool, rb, cout_chunk):
    """Stride-1 conv + bias + ReLU (+ fused pool x pool max-pool), rb rows/step.

    refs (pool>1): x(1,H,Cin,Wp) w(kh,kw,Co,Cin) b(Co,1) sel(pool,Wp,Wop) o(1,rb,Co,Wop)
    refs (pool=1): x, w, b, o  (output width == input padded width)
    """
    if pool > 1:
        x_ref, w_ref, b_ref, sel_ref, o_ref = refs
    else:
        x_ref, w_ref, b_ref, o_ref = refs
        sel_ref = None
    r = pl.program_id(1)
    cin = x_ref.shape[2]
    w_pad = x_ref.shape[3]
    cout = w_ref.shape[2]
    n_co = max(1, cout // cout_chunk)          # split Cout to bound vreg live range
    cc = cout // n_co

    def row_body(pr, carry):
        out_r = r * rb + pr
        for co in range(n_co):
            co0 = co * cc
            b_blk = b_ref[...] if n_co == 1 else b_ref[pl.ds(co0, cc), :]
            row_max = None
            for dc in range(pool):                      # pool rows (1 if no pool)
                conv_r = out_r * pool + dc
                acc = jnp.zeros((cc, w_pad), jnp.float32)
                for dh in range(kh):
                    x_row = x_ref[0, conv_r + dh]       # (Cin, W_pad) bf16
                    for dw in range(kw):
                        if dw == 0:
                            xs = x_row
                        else:                            # XLU lane shift, free next to MXU
                            xs = pltpu.roll(x_row, _shift_amount(dw, w_pad), 1)
                        if n_co == 1:
                            w_tap = w_ref[dh, dw]
                        else:
                            w_tap = w_ref[dh, dw, pl.ds(co0, cc), :]
                        if cin == 1:                     # layer 1: VPU broadcast FMA
                            acc = acc + (w_tap.astype(jnp.float32)
                                         * xs.astype(jnp.float32))
                        else:
                            acc = acc + jnp.dot(
                                w_tap, xs, preferred_element_type=jnp.float32)
                acc = jnp.maximum(acc + b_blk, 0.0)      # bias + ReLU (f32)
                row_max = acc if row_max is None else jnp.maximum(row_max, acc)
            if pool > 1:
                rm = row_max.astype(jnp.bfloat16)
                cols = None
                for dc2 in range(pool):                  # exact one-hot column decimation
                    v = jnp.dot(rm, sel_ref[dc2],
                                preferred_element_type=jnp.float32)
                    cols = v if cols is None else jnp.maximum(cols, v)
                out_val = cols.astype(o_ref.dtype)
            else:
                out_val = row_max.astype(o_ref.dtype)
            if n_co == 1:
                o_ref[0, pr] = out_val
            else:
                o_ref[0, pr, pl.ds(co0, cc), :] = out_val
        return carry

    lax.fori_loop(0, rb, row_body, 0)


def _conv_s2_row_kernel(x_ref, w_ref, b_ref, sel_ref, o_ref, *, kh, kw, stride):
    """One output row of the (tiny) stride-2 conv of layer 6 + bias + ReLU."""
    r = pl.program_id(1)
    row0 = r * stride
    cout, wo = o_ref.shape[2], o_ref.shape[3]
    acc = jnp.zeros((cout, wo), jnp.float32)
    for dh in range(kh):
        x_row = x_ref[0, row0 + dh]                      # (Cin, W_pad) bf16
        for dw in range(kw):
            patch = jnp.dot(x_row, sel_ref[dw],
                            preferred_element_type=jnp.float32)   # exact gather
            acc = acc + jnp.dot(w_ref[dh, dw], patch.astype(jnp.bfloat16),
                                preferred_element_type=jnp.float32)
    acc = jnp.maximum(acc + b_ref[...], 0.0)
    o_ref[0, 0] = acc.astype(o_ref.dtype)


def _maxpool_kernel(x_ref, sel_ref, o_ref, *, ks):
    """ks x ks / stride-ks max pool, one output row per step (used for layer 6)."""
    rowmax = x_ref[0, 0]
    for dr in range(1, ks):
        rowmax = jnp.maximum(rowmax, x_ref[0, dr])
    acc = None
    for dc in range(ks):
        v = jnp.dot(rowmax, sel_ref[dc], preferred_element_type=jnp.float32)
        acc = v if acc is None else jnp.maximum(acc, v)
    o_ref[0, 0] = acc.astype(o_ref.dtype)


def _tail_kernel(x_ref, w7_ref, b7_ref, w1_ref, b1_ref, w2_ref, b2_ref, o_ref):
    """conv7 (as a flattened matmul) + ReLU + fc1 + ReLU + fc2 + ReLU."""
    h = jnp.dot(x_ref[...], w7_ref[...], preferred_element_type=jnp.float32)
    h = jnp.maximum(h + b7_ref[...], 0.0).astype(jnp.bfloat16)
    h = jnp.dot(h, w1_ref[...], preferred_element_type=jnp.float32)
    h = jnp.maximum(h + b1_ref[...], 0.0).astype(jnp.bfloat16)
    h = jnp.dot(h, w2_ref[...], preferred_element_type=jnp.float32)
    o_ref[...] = jnp.maximum(h + b2_ref[...], 0.0)


# ------------------------------ wrappers ------------------------------------

def _decim_sel(w_in, w_out_pad, w_out_real, k, stride):
    """sel[j, q, p] = 1.0 iff q == p*stride + j and p < w_out_real (bf16 one-hot)."""
    q = jnp.arange(w_in)[None, :, None]
    p = jnp.arange(w_out_pad)[None, None, :]
    j = jnp.arange(k)[:, None, None]
    return ((q == p * stride + j) & (p < w_out_real)).astype(jnp.bfloat16)


def conv_relu_pool_s1(x, w, b, *, pool, w_real):
    """Stride-1 conv + bias + ReLU with an optional fused max-pool."""
    B, H_in, Cin, W_pad = x.shape
    kh, kw, Cout, _ = w.shape
    Hc = H_in - kh + 1                  # conv output rows
    Wc = w_real - kw + 1                # real conv output cols
    if pool > 1:
        Ho = (Hc - pool) // pool + 1
        Wo_real = (Wc - pool) // pool + 1
        Wo_pad = _round_up(Wo_real, 128)
    else:
        Ho, Wo_real, Wo_pad = Hc, Wc, W_pad
    nblk = 2 if Ho % 2 == 0 else 1
    rb = Ho // nblk

    kernel = functools.partial(
        _conv_s1_kernel, kh=kh, kw=kw, pool=pool, rb=rb, cout_chunk=128)
    in_specs = [
        pl.BlockSpec((1, H_in, Cin, W_pad), lambda bb, rr: (bb, 0, 0, 0)),
        pl.BlockSpec((kh, kw, Cout, Cin), lambda bb, rr: (0, 0, 0, 0)),
        pl.BlockSpec((Cout, 1), lambda bb, rr: (0, 0)),
    ]
    args = [x, w, b]
    if pool > 1:
        sel = _decim_sel(W_pad, Wo_pad, Wo_real, pool, pool)
        in_specs.append(pl.BlockSpec((pool, W_pad, Wo_pad),
                                     lambda bb, rr: (0, 0, 0)))
        args.append(sel)
    out = pl.pallas_call(
        kernel,
        out_shape=jax.ShapeDtypeStruct((B, Ho, Cout, Wo_pad), jnp.bfloat16),
        grid=(B, nblk),
        in_specs=in_specs,
        out_specs=pl.BlockSpec((1, rb, Cout, Wo_pad),
                               lambda bb, rr: (bb, rr, 0, 0)),
        compiler_params=pltpu.CompilerParams(
            dimension_semantics=("parallel", "parallel"),
            vmem_limit_bytes=48 * 1024 * 1024),
    )(*args)
    return out, Wo_real


def conv_relu_s2(x, w, b, *, w_real, stride):
    B, H_in, Cin, W_pad = x.shape
    kh, kw, Cout, _ = w.shape
    Ho = (H_in - kh) // stride + 1
    Wo = (w_real - kw) // stride + 1
    sel = _decim_sel(W_pad, Wo, Wo, kw, stride)
    return pl.pallas_call(
        functools.partial(_conv_s2_row_kernel, kh=kh, kw=kw, stride=stride),
        out_shape=jax.ShapeDtypeStruct((B, Ho, Cout, Wo), jnp.bfloat16),
        grid=(B, Ho),
        in_specs=[
            pl.BlockSpec((1, H_in, Cin, W_pad), lambda bb, rr: (bb, 0, 0, 0)),
            pl.BlockSpec((kh, kw, Cout, Cin), lambda bb, rr: (0, 0, 0, 0)),
            pl.BlockSpec((Cout, 1), lambda bb, rr: (0, 0)),
            pl.BlockSpec((kw, W_pad, Wo), lambda bb, rr: (0, 0, 0)),
        ],
        out_specs=pl.BlockSpec((1, 1, Cout, Wo), lambda bb, rr: (bb, rr, 0, 0)),
        compiler_params=pltpu.CompilerParams(
            dimension_semantics=("parallel", "parallel"),
            vmem_limit_bytes=48 * 1024 * 1024),
    )(x, w, b, sel)


def maxpool2d(x, ks):
    B, H, C, W = x.shape
    Ho, Wo = H // ks, W // ks
    sel = _decim_sel(W, Wo, Wo, ks, ks)
    return pl.pallas_call(
        functools.partial(_maxpool_kernel, ks=ks),
        out_shape=jax.ShapeDtypeStruct((B, Ho, C, Wo), jnp.bfloat16),
        grid=(B, Ho),
        in_specs=[
            pl.BlockSpec((1, ks, C, W), lambda bb, rr: (bb, rr, 0, 0)),
            pl.BlockSpec((ks, W, Wo), lambda bb, rr: (0, 0, 0)),
        ],
        out_specs=pl.BlockSpec((1, 1, C, Wo), lambda bb, rr: (bb, rr, 0, 0)),
        compiler_params=pltpu.CompilerParams(
            dimension_semantics=("parallel", "parallel")),
    )(x, sel)


def tail_fc(x2d, params):
    w7 = params["conv7_w"]                              # (2, 2, 512, 256) bf16
    kh7, kw7, co7, ci7 = w7.shape
    # flatten order of x2d is (h, c, w) -> arrange conv7 weights to match
    w7f = jnp.transpose(w7, (0, 3, 1, 2)).reshape(kh7 * ci7 * kw7, co7)
    b7 = jnp.transpose(params["conv7_b"])               # (1, 512) f32
    no_classes = params["fc2_w"].shape[1]
    return pl.pallas_call(
        _tail_kernel,
        out_shape=jax.ShapeDtypeStruct((x2d.shape[0], no_classes), jnp.float32),
    )(x2d, w7f, b7, params["fc1_w"], params["fc1_b"],
      params["fc2_w"], params["fc2_b"])


# ------------------------------ model ---------------------------------------

def init_params(key, no_classes=100):
    params = {}
    for i, (kh, kw, cin, cout, _, _) in enumerate(_CONV_CFG, start=1):
        key, k_w, k_b = jax.random.split(key, 3)
        std = math.sqrt(2.0 / (kh * kw * cin))
        params[f"conv{i}_w"] = (std * jax.random.normal(
            k_w, (kh, kw, cout, cin), jnp.float32)).astype(jnp.bfloat16)
        params[f"conv{i}_b"] = 0.01 * jax.random.normal(
            k_b, (cout, 1), jnp.float32)
    for name, fin, fout in [("fc1", 512, 256), ("fc2", 256, no_classes)]:
        key, k_w, k_b = jax.random.split(key, 3)
        std = math.sqrt(2.0 / fin)
        params[f"{name}_w"] = (std * jax.random.normal(
            k_w, (fin, fout), jnp.float32)).astype(jnp.bfloat16)
        params[f"{name}_b"] = 0.01 * jax.random.normal(
            k_b, (1, fout), jnp.float32)
    return params


def pad_wrap1d(x, pad):
    # exact mirror of Pigeon.pad_wrap1d (wrap-pad the last / time axis by `pad`)
    x = jnp.concatenate([x, x[:, :, :, :pad]], axis=3)
    x = jnp.concatenate([x[:, :, :, -2 * pad:-pad], x], axis=3)
    return x


@jax.jit
def pigeon_forward(x_nchw, params):
    x = pad_wrap1d(x_nchw, 20)
    x = jnp.transpose(x, (0, 2, 1, 3)).astype(jnp.bfloat16)   # NCHW -> (B, H, C, W)
    w_real = x.shape[3]                                       # 256 (already 128-aligned)
    # layers 1-5: stride-1 conv (+ fused max-pool where present)
    for i in range(1, 6):
        kh, kw, cin, cout, stride, pool = _CONV_CFG[i - 1]
        x, w_real = conv_relu_pool_s1(
            x, params[f"conv{i}_w"], params[f"conv{i}_b"],
            pool=(pool or 1), w_real=w_real)
    # layer 6: stride-2 conv, then 3x3/3 max pool
    x = conv_relu_s2(x, params["conv6_w"], params["conv6_b"],
                     w_real=w_real, stride=2)                 # (B, 6, 256, 6)
    x = maxpool2d(x, 3)                                       # (B, 2, 256, 2)
    # layer 7 + fc1 + fc2, fused into one kernel
    x = x.reshape(x.shape[0], -1)                             # (B, 1024) bf16
    return tail_fc(x, params)


# pure-JAX reference with matched precision (bf16 operands, f32 accumulation)
@jax.jit
def reference_forward(x_nchw, params):
    x = pad_wrap1d(x_nchw, 20)
    x = jnp.transpose(x, (0, 2, 3, 1)).astype(jnp.bfloat16)   # NHWC, bf16
    for i, (kh, kw, cin, cout, stride, pool) in enumerate(_CONV_CFG, start=1):
        w = jnp.transpose(params[f"conv{i}_w"], (0, 1, 3, 2))  # -> HWIO, bf16
        b = params[f"conv{i}_b"][:, 0]                         # (Cout,), f32
        y = lax.conv_general_dilated(
            x, w, (stride, stride), "VALID",
            dimension_numbers=("NHWC", "HWIO", "NHWC"),
            preferred_element_type=jnp.float32)
        y = jnp.maximum(y + b[None, None, None, :], 0.0).astype(jnp.bfloat16)
        if pool is not None:
            y = lax.reduce_window(
                y, jnp.array(0, y.dtype), lax.max,      # activations are >= 0
                (1, pool, pool, 1), (1, pool, pool, 1), "VALID")
        x = y
    x = x.reshape(x.shape[0], 512)
    h = jnp.maximum(
        jnp.dot(x, params["fc1_w"], preferred_element_type=jnp.float32)
        + params["fc1_b"], 0.0).astype(jnp.bfloat16)
    return jnp.maximum(
        jnp.dot(h, params["fc2_w"], preferred_element_type=jnp.float32)
        + params["fc2_b"], 0.0)


if __name__ == "__main__":
    _ = _roll_like_jnp()   # resolve the hardware roll convention once, eagerly
    key = jax.random.PRNGKey(0)
    k_x, k_p = jax.random.split(key)
    # (batch, channel=1, freq=256, time=216) — the sizes the module was built for
    x = jax.random.normal(k_x, (2, 1, 256, 216), jnp.float32)
    params = init_params(k_p, no_classes=100)

    out = jax.block_until_ready(pigeon_forward(x, params))
    assert out.shape == (2, 100), out.shape
    assert bool(jnp.all(jnp.isfinite(out)))

    ref = jax.block_until_ready(reference_forward(x, params))
    max_err = float(jnp.max(jnp.abs(out - ref)))
    assert bool(jnp.allclose(out, ref, rtol=5e-2, atol=1e-1)), \
        f"max abs err {max_err}"

    print("KERNEL_OK")
</pallas_src>

<mosaic_0001>
module attributes {stable_mosaic.version = 11 : i64} {
  func.func @kernel(%arg0: memref<8x128xf32, #tpu.memory_space<vmem>>, %arg1: memref<8x128xf32, #tpu.memory_space<vmem>>) attributes {dimension_semantics = [], scalar_prefetch = 0 : i64, scratch_operands = 0 : i64, tpu.core_type = #tpu.core_type<tc>} {
    %c0 = arith.constant 0 : index
    %c0_0 = arith.constant 0 : index
    %0 = vector.load %arg0[%c0, %c0_0] : memref<8x128xf32, #tpu.memory_space<vmem>>, vector<8x128xf32>
    %c1_i32 = arith.constant 1 : i32
    %1 = tpu.dynamic_rotate %0 by %c1_i32 dim 1 : vector<8x128xf32>, i32 -> vector<8x128xf32>
    %c0_1 = arith.constant 0 : index
    %c0_2 = arith.constant 0 : index
    %2 = vector.load %arg1[%c0_1, %c0_2] : memref<8x128xf32, #tpu.memory_space<vmem>>, vector<8x128xf32>
    tpu.vector_store %arg1[%c0_1, %c0_2], %1 {strides = array<i32>} : memref<8x128xf32, #tpu.memory_space<vmem>>, vector<8x128xf32>,
    return
  }
}

</mosaic_0001>

<bundles_post_ra>
// kernel: tpu_custom_call.1
= control target key start
LH: loop header
LB: loop body
LE: loop exit
PB: predicated region body
PF: predicated region fallthrough
CT: control target
= control target key end

     0   :  { %6 = vsyncpa [#allocation3], 0  ;;  %s128_s0 = inlined_call_operand.hbm [shape: f32[8,128], index: 0, kind: input, shape index: {}]   ;;  %s129_s1 = inlined_call_operand.hbm [shape: f32[8,128], index: 1, kind: output, shape index: {}]  }
   0x1   :  { %7 = vsyncpa [#allocation4], 0  ;;  %s91_s6 = smov [#allocation2]   ;;  %s43_s10 = scalar_lea.hbm %s128_s0, 128 }
   0x2   :  { %s14_s7 = sshll.u32 %s91_s6, 4  ;;  %p44_p0 = scmp.ne.s32.totalorder %s128_s0, %s43_s10  ;;  %s15_s7 = int_to_ptr.vmem [resolvable:$true] %s14_s7 }
   0x3   :  { %p47_p1 = scmp.lt.u32.totalorder %s43_s10, %s128_s0 }
   0x5   :  { %p49_p2 = pnand %p47_p1, %p44_p0 }
   0x7   :  { %52 = shalt.err (!%p49_p2)
}
   0x8   :  { %s53_s15 = scalar_lea.vmem %s15_s7, 128  ;;  %p58_p4 = scmp.lt.s32.totalorder %s15_s7, %s15_s7 }
   0x9   :  { %p54_p3 = scmp.ne.s32.totalorder %s15_s7, %s53_s15  ;;  %p59_p5 = scmp.lt.s32.totalorder %s53_s15, %s53_s15 }
   0xb   :  { %p60_p6 = por %p59_p5, %p58_p4 }
   0xd   :  { %p61_p7 = pnand %p60_p6, %p54_p3 }
   0xf   :  { %64 = shalt.err (!%p61_p7)
}
  0x10   :  { %17 = dma.hbm_to_vmem [thread:$0]  %s128_s0, 128, %s15_s7, [#allocation3]  }
  0x11   :  { %87 = dma.done.wait [#allocation3], 128  }
  0x12   :  { %88 = vsyncadd [#allocation3], 4294967168  ;;  %v21_v0 = vld [vmem:[#allocation2] sm:$0xff]  ;;  %s92_s18 = smov 1   ;;  %s93_s19 = smov [#allocation5]  }
  0x13   :  { %22 = vrot.lane.b32.xlu0 %v21_v0, %s92_s18  ;;  %s31_s20 = sshll.u32 %s93_s19, 4  ;;  %s32_s20 = int_to_ptr.vmem [resolvable:$true] %s31_s20 }
  0x14   :  { %s65_s21 = scalar_lea.vmem %s32_s20, 128  ;;  %p70_p9 = scmp.lt.s32.totalorder %s32_s20, %s32_s20 }
  0x15   :  { %p66_p8 = scmp.ne.s32.totalorder %s32_s20, %s65_s21  ;;  %p71_p10 = scmp.lt.s32.totalorder %s65_s21, %s65_s21 }
  0x17   :  { %p72_p11 = por %p71_p10, %p70_p9 }
  0x19   :  { %p73_p12 = pnand %p72_p11, %p66_p8 }
  0x85   :  { %v23_v1 = vpop.permute.xlu0 %22 }
  0x86   :  { %24 = vst [vmem:[#allocation5] sm:$0xff] %v23_v1 }
  0x87   :  { %76 = shalt.err (!%p73_p12)
}
  0x88   :  { %s77_s0 = scalar_lea.hbm %s129_s1, 128 }
  0x89   :  { %p78_p13 = scmp.ne.s32.totalorder %s129_s1, %s77_s0  ;;  %p81_p0 = scmp.lt.u32.totalorder %s77_s0, %s129_s1 }
  0x8b   :  { %p83_p1 = pnand %p81_p0, %p78_p13 }
  0x8d   :  { %86 = shalt.err (!%p83_p1)
}
  0x8e   :  { %34 = dma.vmem_to_hbm [thread:$0]  %s32_s20, 128, %s129_s1, [#allocation4]  }
  0x8f   :  { %89 = dma.done.wait [#allocation4], 128  }
  0x90   :  { %90 = vsyncadd [#allocation4], 4294967168 }
  0x91   :  { %38 = vsyncpa [#allocation3], 1 }
  0x92   :  { %39 = vsyncpa [#allocation4], 1 }

</bundles_post_ra>
